<compile_context>
chip_gen: v7x
topology: tpu7x:2x2x1
jax: 0.10.0
libtpu: 0.0.40
codegen_flags: <defaults>
</compile_context>

<pallas_src>
import functools

import jax
import jax.numpy as jnp
from jax.experimental import pallas as pl
from jax.experimental.pallas import tpu as pltpu

EPSILON = 1e-9          # matches EPISILON in the PyTorch module
NORM_EPS = 1e-12        # F.normalize default eps
TEMPERATURE = 0.1


def _nce_loss_kernel(f1_ref, f2_ref, trow_ref, tcol_ref, out_ref, *, temperature):
    f1 = f1_ref[...].astype(jnp.float32)        # (TM, Dp)
    f2 = f2_ref[...].astype(jnp.float32)        # (B,  Dp)
    t_row = trow_ref[...]                       # (1, B)  int32
    t_col = tcol_ref[...]                       # (TM, 1) int32

    # --- L2 normalize rows (F.normalize, dim=1, eps=1e-12) ---
    # exact reciprocal only on (TM + B) per-row scalars; row scaling is a mul.
    n1 = jnp.sqrt(jnp.sum(f1 * f1, axis=1, keepdims=True))             # (TM, 1)
    n2 = jnp.sqrt(jnp.sum(f2 * f2, axis=1, keepdims=True))             # (B, 1)
    f1n = f1 * pl.reciprocal(jnp.maximum(n1, NORM_EPS), approx=False)
    f2n = f2 * pl.reciprocal(jnp.maximum(n2, NORM_EPS), approx=False)

    # --- logits = cos/T = (f1n @ f2n.T)/T  (unit-norm identity; MXU hot path) ---
    if f1_ref.dtype == jnp.bfloat16 and f2_ref.dtype == jnp.bfloat16:
        lhs, rhs = f1n.astype(jnp.bfloat16), f2n.astype(jnp.bfloat16)
    else:
        lhs, rhs = f1n, f2n
    gram = jax.lax.dot_general(lhs, rhs, (((1,), (1,)), ((), ())),
                               preferred_element_type=jnp.float32)      # (TM, B)
    logits = gram * jnp.float32(1.0 / temperature)

    # --- stabilized row softmax pieces ---
    m = jnp.max(logits, axis=1, keepdims=True)          # (TM, 1)
    e = jnp.exp(logits - m)                              # (TM, B) one EUP exp
    s = jnp.sum(e, axis=1, keepdims=True)                # (TM, 1)
    lse = jnp.log(s)                                     # (TM, 1)

    # p = e / s.  Both branches kept exact (incl. +eps), single (TM,B) log:
    #   same label (positive): -log(p + eps)     = lse - log(e     + eps*s)
    #   diff label (negative): -log(1 - p + eps) = lse - log(s - e + eps*s)
    same = t_col == t_row                                # (TM, B) bool
    sel = jnp.where(same, e, s - e) + jnp.float32(EPSILON) * s
    ncols = logits.shape[1]                              # full batch size B
    row_sum = ncols * lse - jnp.sum(jnp.log(sel), axis=1, keepdims=True)  # (TM,1)

    # denom = #same-label columns per row (>= 1, diagonal is always "same").
    denom = jnp.sum(same.astype(jnp.float32), axis=1, keepdims=True)      # (TM,1)
    out_ref[...] = row_sum * pl.reciprocal(denom, approx=False)


def _pick_row_tile(batch):
    for cand in (256, 128, 64, 32, 16, 8):
        if batch % cand == 0:
            return cand
    return batch  # ragged small batch: single full block


def nce_loss(f1, f2, targets, temperature=TEMPERATURE):
    """f1, f2: (B, D) float; targets: (B,) int. Returns scalar f32 loss."""
    B, D = f1.shape

    # Zero-pad the feature dim to a multiple of 128 lanes (does not change row
    # norms or inner products) -> unmasked MXU operand loads.
    Dp = ((D + 127) // 128) * 128
    if Dp != D:
        f1 = jnp.pad(f1, ((0, 0), (0, Dp - D)))
        f2 = jnp.pad(f2, ((0, 0), (0, Dp - D)))

    t_row = targets.astype(jnp.int32).reshape(1, B)
    t_col = targets.astype(jnp.int32).reshape(B, 1)

    tm = _pick_row_tile(B)
    grid = (B // tm,)

    kernel = functools.partial(_nce_loss_kernel, temperature=float(temperature))
    per_row = pl.pallas_call(
        kernel,
        out_shape=jax.ShapeDtypeStruct((B, 1), jnp.float32),
        grid_spec=pltpu.PrefetchScalarGridSpec(
            num_scalar_prefetch=0,
            grid=grid,
            in_specs=[
                pl.BlockSpec((tm, Dp), lambda i: (i, 0)),   # f1 row tile (pipelined)
                pl.BlockSpec((B, Dp), lambda i: (0, 0)),    # f2 resident
                pl.BlockSpec((1, B), lambda i: (0, 0)),     # targets as row, resident
                pl.BlockSpec((tm, 1), lambda i: (i, 0)),    # targets as column, tiled
            ],
            out_specs=pl.BlockSpec((tm, 1), lambda i: (i, 0)),
        ),
        compiler_params=pltpu.CompilerParams(
            dimension_semantics=("parallel",),           # megacore on v7x
            vmem_limit_bytes=48 * 1024 * 1024,
        ),
    )(f1, f2, t_row, t_col)
    # Final mean over rows is a trivial XLA reduce.
    return jnp.mean(per_row)


def nce_loss_ref(f1, f2, targets, temperature=TEMPERATURE):
    """Pure-JAX reference mirroring the PyTorch forward, for verification."""
    f1 = f1.astype(jnp.float32)
    f2 = f2.astype(jnp.float32)
    f1n = f1 / jnp.maximum(jnp.linalg.norm(f1, axis=1, keepdims=True), NORM_EPS)
    f2n = f2 / jnp.maximum(jnp.linalg.norm(f2, axis=1, keepdims=True), NORM_EPS)
    mask = targets[:, None] - targets[None, :]
    self_mask = (mask != 0).astype(jnp.float32)
    dist = jnp.sum((f1n[:, None, :] - f2n[None, :, :]) ** 2, axis=2)
    cos = 1.0 - 0.5 * dist
    p = jax.nn.softmax(cos / temperature, axis=1)
    log_pos = -jnp.log(p + EPSILON) * (1.0 - self_mask)
    log_neg = -jnp.log(1.0 - p + EPSILON) * self_mask
    denom = jnp.sum(1.0 - self_mask, axis=1)
    per_row = jnp.sum(log_pos, axis=1) / denom + jnp.sum(log_neg, axis=1) / denom
    return jnp.mean(per_row)


if __name__ == "__main__":
    key = jax.random.PRNGKey(0)
    k1, k2, k3 = jax.random.split(key, 3)

    B, D = 8, 32
    f1 = jax.random.normal(k1, (B, D), dtype=jnp.float32)
    f2 = jax.random.normal(k2, (B, D), dtype=jnp.float32)
    targets = jax.random.randint(k3, (B,), 0, 2, dtype=jnp.int32)

    loss = jax.block_until_ready(nce_loss(f1, f2, targets))
    ref = jax.block_until_ready(nce_loss_ref(f1, f2, targets))

    assert jnp.isfinite(loss), "kernel produced non-finite loss"
    assert jnp.allclose(loss, ref, rtol=1e-4, atol=1e-4), (loss, ref)
    print("KERNEL_OK")
</pallas_src>

<mosaic_0001>
module attributes {stable_mosaic.version = 11 : i64} {
  func.func @_nce_loss_kernel(%arg0: i32, %arg1: memref<8x128xf32, #tpu.memory_space<vmem>>, %arg2: memref<8x128xf32, #tpu.memory_space<vmem>>, %arg3: memref<1x8xi32, #tpu.memory_space<vmem>>, %arg4: memref<8x1xi32, #tpu.memory_space<vmem>>, %arg5: memref<8x1xf32, #tpu.memory_space<vmem>>) attributes {dimension_semantics = [#tpu.dimension_semantics<parallel>], iteration_bounds = array<i64: 1>, scalar_prefetch = 0 : i64, scratch_operands = 0 : i64, tpu.core_type = #tpu.core_type<tc>, window_params = [{transform_indices = @transform_0, window_bounds = array<i64: 8, 128>}, {pipeline_mode = #tpu.pipeline_mode<synchronous>, transform_indices = @transform_1, window_bounds = array<i64: 8, 128>}, {pipeline_mode = #tpu.pipeline_mode<synchronous>, transform_indices = @transform_2, window_bounds = array<i64: 1, 8>}, {transform_indices = @transform_3, window_bounds = array<i64: 8, 1>}, {transform_indices = @transform_4, window_bounds = array<i64: 8, 1>}]} {
    %c0 = arith.constant 0 : index
    %c0_0 = arith.constant 0 : index
    %0 = vector.load %arg1[%c0, %c0_0] : memref<8x128xf32, #tpu.memory_space<vmem>>, vector<8x128xf32>
    %c0_1 = arith.constant 0 : index
    %c0_2 = arith.constant 0 : index
    %1 = vector.load %arg2[%c0_1, %c0_2] : memref<8x128xf32, #tpu.memory_space<vmem>>, vector<8x128xf32>
    %c0_3 = arith.constant 0 : index
    %c0_4 = arith.constant 0 : index
    %2 = vector.load %arg3[%c0_3, %c0_4] : memref<1x8xi32, #tpu.memory_space<vmem>>, vector<1x8xi32>
    %c0_5 = arith.constant 0 : index
    %c0_6 = arith.constant 0 : index
    %3 = vector.load %arg4[%c0_5, %c0_6] : memref<8x1xi32, #tpu.memory_space<vmem>>, vector<8x1xi32>
    %4 = arith.mulf %0, %0 : vector<8x128xf32>
    %cst = arith.constant dense<0.000000e+00> : vector<8xf32>
    %5 = vector.multi_reduction <add>, %4, %cst [1] : vector<8x128xf32> to vector<8xf32>
    %6 = vector.shape_cast %5 : vector<8xf32> to vector<8x1xf32>
    %7 = math.sqrt %6 : vector<8x1xf32>
    %8 = arith.mulf %1, %1 : vector<8x128xf32>
    %cst_7 = arith.constant dense<0.000000e+00> : vector<8xf32>
    %9 = vector.multi_reduction <add>, %8, %cst_7 [1] : vector<8x128xf32> to vector<8xf32>
    %10 = vector.shape_cast %9 : vector<8xf32> to vector<8x1xf32>
    %11 = math.sqrt %10 : vector<8x1xf32>
    %cst_8 = arith.constant 9.99999996E-13 : f32
    %12 = vector.broadcast %cst_8 : f32 to vector<8x1xf32>
    %13 = arith.maximumf %7, %12 : vector<8x1xf32>
    %14 = tpu.reciprocal %13 : vector<8x1xf32> -> vector<8x1xf32>
    %15 = vector.broadcast %14 : vector<8x1xf32> to vector<8x128xf32>
    %16 = arith.mulf %0, %15 : vector<8x128xf32>
    %cst_9 = arith.constant 9.99999996E-13 : f32
    %17 = vector.broadcast %cst_9 : f32 to vector<8x1xf32>
    %18 = arith.maximumf %11, %17 : vector<8x1xf32>
    %19 = tpu.reciprocal %18 : vector<8x1xf32> -> vector<8x1xf32>
    %20 = vector.broadcast %19 : vector<8x1xf32> to vector<8x128xf32>
    %21 = arith.mulf %1, %20 : vector<8x128xf32>
    %cst_10 = arith.constant dense<0.000000e+00> : vector<8x8xf32>
    %22 = tpu.matmul %16, %21, %cst_10 {dimension_numbers = #tpu.dot_dimension_numbers<[1], [1], [0], [0], [0, 0, 1, 0], [], []>} : vector<8x128xf32>, vector<8x128xf32>, vector<8x8xf32> -> vector<8x8xf32>
    %cst_11 = arith.constant 1.000000e+01 : f32
    %23 = vector.broadcast %cst_11 : f32 to vector<8x8xf32>
    %24 = arith.mulf %22, %23 : vector<8x8xf32>
    %cst_12 = arith.constant dense<0xFF800000> : vector<8xf32>
    %25 = vector.multi_reduction <maximumf>, %24, %cst_12 [1] : vector<8x8xf32> to vector<8xf32>
    %26 = vector.shape_cast %25 : vector<8xf32> to vector<8x1xf32>
    %27 = vector.broadcast %26 : vector<8x1xf32> to vector<8x8xf32>
    %28 = arith.subf %24, %27 : vector<8x8xf32>
    %29 = math.exp %28 : vector<8x8xf32>
    %cst_13 = arith.constant dense<0.000000e+00> : vector<8xf32>
    %30 = vector.multi_reduction <add>, %29, %cst_13 [1] : vector<8x8xf32> to vector<8xf32>
    %31 = vector.shape_cast %30 : vector<8xf32> to vector<8x1xf32>
    %32 = math.log %31 : vector<8x1xf32>
    %33 = vector.broadcast %3 : vector<8x1xi32> to vector<8x8xi32>
    %34 = vector.broadcast %2 : vector<1x8xi32> to vector<8x8xi32>
    %35 = arith.cmpi eq, %33, %34 : vector<8x8xi32>
    %36 = vector.broadcast %31 : vector<8x1xf32> to vector<8x8xf32>
    %37 = arith.subf %36, %29 : vector<8x8xf32>
    %38 = arith.select %35, %29, %37 : vector<8x8xi1>, vector<8x8xf32>
    %cst_14 = arith.constant 9.99999971E-10 : f32
    %39 = vector.broadcast %cst_14 : f32 to vector<8x1xf32>
    %40 = arith.mulf %39, %31 : vector<8x1xf32>
    %41 = vector.broadcast %40 : vector<8x1xf32> to vector<8x8xf32>
    %42 = arith.addf %38, %41 : vector<8x8xf32>
    %cst_15 = arith.constant 8.000000e+00 : f32
    %43 = vector.broadcast %cst_15 : f32 to vector<8x1xf32>
    %44 = arith.mulf %43, %32 : vector<8x1xf32>
    %45 = math.log %42 : vector<8x8xf32>
    %cst_16 = arith.constant dense<0.000000e+00> : vector<8xf32>
    %46 = vector.multi_reduction <add>, %45, %cst_16 [1] : vector<8x8xf32> to vector<8xf32>
    %47 = vector.shape_cast %46 : vector<8xf32> to vector<8x1xf32>
    %48 = arith.subf %44, %47 : vector<8x1xf32>
    %49 = arith.extui %35 : vector<8x8xi1> to vector<8x8xi32>
    %50 = arith.sitofp %49 : vector<8x8xi32> to vector<8x8xf32>
    %cst_17 = arith.constant dense<0.000000e+00> : vector<8xf32>
    %51 = vector.multi_reduction <add>, %50, %cst_17 [1] : vector<8x8xf32> to vector<8xf32>
    %52 = vector.shape_cast %51 : vector<8xf32> to vector<8x1xf32>
    %53 = tpu.reciprocal %52 : vector<8x1xf32> -> vector<8x1xf32>
    %54 = arith.mulf %48, %53 : vector<8x1xf32>
    %c0_18 = arith.constant 0 : index
    %c0_19 = arith.constant 0 : index
    %55 = vector.load %arg5[%c0_18, %c0_19] : memref<8x1xf32, #tpu.memory_space<vmem>>, vector<8x1xf32>
    tpu.vector_store %arg5[%c0_18, %c0_19], %54 {strides = array<i32>} : memref<8x1xf32, #tpu.memory_space<vmem>>, vector<8x1xf32>,
    return
  }
  func.func @transform_0(%arg0: i32) -> (i32, i32) {
    %c0_i32 = arith.constant 0 : i32
    %c0_i32_0 = arith.constant 0 : i32
    return %arg0, %c0_i32 : i32, i32
  }
  func.func @transform_1(%arg0: i32) -> (i32, i32) {
    %c0_i32 = arith.constant 0 : i32
    %c0_i32_0 = arith.constant 0 : i32
    %c0_i32_1 = arith.constant 0 : i32
    return %c0_i32, %c0_i32_0 : i32, i32
  }
  func.func @transform_2(%arg0: i32) -> (i32, i32) {
    %c0_i32 = arith.constant 0 : i32
    %c0_i32_0 = arith.constant 0 : i32
    %c0_i32_1 = arith.constant 0 : i32
    return %c0_i32, %c0_i32_0 : i32, i32
  }
  func.func @transform_3(%arg0: i32) -> (i32, i32) {
    %c0_i32 = arith.constant 0 : i32
    %c0_i32_0 = arith.constant 0 : i32
    return %arg0, %c0_i32 : i32, i32
  }
  func.func @transform_4(%arg0: i32) -> (i32, i32) {
    %c0_i32 = arith.constant 0 : i32
    %c0_i32_0 = arith.constant 0 : i32
    return %arg0, %c0_i32 : i32, i32
  }
}

</mosaic_0001>

<bundles_post_ra>
// kernel: tpu_custom_call.1
= control target key start
LH: loop header
LB: loop body
LE: loop exit
PB: predicated region body
PF: predicated region fallthrough
CT: control target
= control target key end

     0   :  { %9 = vsyncpa [#allocation3], 0  ;;  %s229_s15 = smov [#allocation2]   ;;  %s286_s0 = inlined_call_operand.vmem [shape: f32[8,128], index: 0, kind: input, shape index: {}]   ;;  %s287_s1 = inlined_call_operand.hbm [shape: f32[8,128], index: 1, kind: input, shape index: {}]   ;;  %s288_s2 = inlined_call_operand.vmem [shape: s32[1,8], index: 2, kind: input, shape index: {}]   ;;  %s289_s3 = inlined_call_operand.vmem [shape: s32[8,1], index: 3, kind: input, shape index: {}]   ;;  %s290_s4 = inlined_call_operand.vmem [shape: f32[8,1], index: 4, kind: output, shape index: {}]  }
   0x1   :  { %s18_s16 = sshll.u32 %s229_s15, 4  ;;  %s205_s19 = scalar_lea.hbm %s287_s1, 128  ;;  %s19_s16 = int_to_ptr.vmem [resolvable:$true] %s18_s16 }
   0x2   :  { %p206_p0 = scmp.ne.s32.totalorder %s287_s1, %s205_s19  ;;  %p209_p1 = scmp.lt.u32.totalorder %s205_s19, %s287_s1 }
   0x4   :  { %p211_p2 = pnand %p209_p1, %p206_p0 }
   0x6   :  { %214 = shalt.err (!%p211_p2)
}
   0x7   :  { %s215_s24 = scalar_lea.vmem %s19_s16, 128  ;;  %p220_p4 = scmp.lt.s32.totalorder %s19_s16, %s19_s16 }
   0x8   :  { %p216_p3 = scmp.ne.s32.totalorder %s19_s16, %s215_s24  ;;  %p221_p5 = scmp.lt.s32.totalorder %s215_s24, %s215_s24 }
   0xa   :  { %p222_p6 = por %p221_p5, %p220_p4 }
   0xc   :  { %p223_p7 = pnand %p222_p6, %p216_p3 }
   0xe   :  { %226 = shalt.err (!%p223_p7)
}
   0xf   :  { %21 = dma.hbm_to_vmem [thread:$0]  %s287_s1, 128, %s19_s16, [#allocation3]  }
  0x10   :  { %227 = dma.done.wait [#allocation3], 128  }
  0x11   :  { %228 = vsyncadd [#allocation3], 4294967168  ;;  %v30_v0 = vld [vmem:[#allocation2] sm:$0xff]  ;;  %v230_v4 = vmov 0.0   ;;  %vm231_vm0 = vmmov 0   ;;  %vm130_vm5 = vcmask 64512  }
  0x12   :  { %v29_v1 = vld [vmem:[%s286_s0] sm:$0xff]  ;;  %v43_v2 = vmul.f32 %v30_v0, %v30_v0  ;;  %179 = vmatprep.subr.mxu0 %v230_v4  ;;  %181 = vmatprep.mubr.msk.f32.mxu0 %vm231_vm0, %v230_v4  ;;  %v232_v28 = vmov 0   ;;  %vm168_vm7 = vcmask 7168  }
  0x13   :  { %v33_v3 = vmul.f32 %v29_v1, %v29_v1  ;;  %v32_v27 = vld [vmem:[%s289_s3] sm:$0xff]  ;;  %188 = vset.pattern.permute.xlu0 %v232_v28 }
  0x14   :  { %44 = vadd.xlane.f32.xlu0 %v43_v2  ;;  %v175_v34 = vld [vmem:[%s288_s2] ss:$0 sm:$0xff] }
  0x18   :  { %34 = vadd.xlane.f32.xlu0 %v33_v3 }
  0x2e   :  { %143 = vperm.xlu0 %188, %v32_v27  }
  0xa1   :  { %v45_v5 = vpop.xlane.xlu0 %44 }
  0xa2   :  { %189 = vrsqrt.f32 %v45_v5  ;;  %vm48_vm1 = vcmp.eq.f32.partialorder %v45_v5, inf  ;;  %v51_v9 = vand.u32 2147483648, %v45_v5  ;;  %vm50_vm2 = vcmp.eq.f32.partialorder %v45_v5, 0.0 }
  0xa5   :  { %v35_v6 = vpop.xlane.xlu0 %34 }
  0xa6   :  { %191 = vrsqrt.f32 %v35_v6  ;;  %vm38_vm3 = vcmp.eq.f32.partialorder %v35_v6, inf  ;;  %v41_v15 = vand.u32 2147483648, %v35_v6  ;;  %vm40_vm4 = vcmp.eq.f32.partialorder %v35_v6, 0.0 }
  0xac   :  { %v190_v7 = vpop.eup %189 }
  0xad   :  { %v47_v8 = vmul.f32 %v190_v7, %v45_v5  ;;  %v144_v35 = vpop.permute.xlu0 %143 }
  0xae   :  { %vm149_vm6 = vcmp.eq.s32.totalorder %v144_v35, %v175_v34 }
  0xaf   :  { %v49_v10 = vsel %vm48_vm1, %v45_v5, %v47_v8  ;;  %v176_v36 = vsel %vm149_vm6, 1.0, %v230_v4 }
  0xb0   :  { %v192_v11 = vpop.eup %191  ;;  %v52_v12 = vsel %vm50_vm2, %v51_v9, %v49_v10  ;;  %v163_v37 = vsel %vm130_vm5, %v176_v36, 0.0 }
  0xb1   :  { %v37_v13 = vmul.f32 %v192_v11, %v35_v6  ;;  %v56_v14 = vmax.f32 %v52_v12, 1e-12 }
  0xb3   :  { %v39_v16 = vsel %vm38_vm3, %v35_v6, %v37_v13  ;;  %193 = vrcp.f32 %v56_v14 }
  0xb4   :  { %v42_v17 = vsel %vm40_vm4, %v41_v15, %v39_v16 }
  0xb5   :  { %v53_v18 = vmax.f32 %v42_v17, 1e-12 }
  0xb7   :  { %195 = vrcp.f32 %v53_v18 }
  0xbd   :  { %v194_v19 = vpop.eup %193 }
  0xbe   :  { %v58_v20 = vmul.f32 %v194_v19, %v30_v0 }
  0xc0   :  { %180 = vmatpush3.xpose.msra.mxu0 %v58_v20 }
  0xc1   :  { %v196_v21 = vpop.eup %195 }
  0xc2   :  { %v55_v22 = vmul.f32 %v196_v21, %v29_v1 }
  0xc4   :  { %182 = vmatmul.mubr.f32.vlgmr.msra.gmra.mrb[0].mxu0 %v55_v22 }
 0x197   :  { %v125_v23 = vpop.f32.mrb[0].mxu0 }
 0x198   :  { %v129_v24 = vmul.f32 10.0, %v125_v23  ;;  %v183_v25 = vpop.f32.mrb[1].mxu0 }
 0x19a   :  { %v131_v26 = vsel %vm130_vm5, %v129_v24, -inf }
 0x19b   :  { %132 = vmax.xlane.f32.xlu1 %v131_v26 }
 0x228   :  { %v133_v29 = vpop.xlane.xlu1 %132 }
 0x229   :  { %v134_v30 = vsub.f32 %v129_v24, %v133_v29 }
 0x22b   :  { %v135_v31 = vmul.f32 1.442695, %v134_v30 }
 0x22d   :  { %197 = vpow2.f32 %v135_v31 }
 0x237   :  { %v198_v32 = vpop.eup %197 }
 0x238   :  { %v137_v33 = vsel %vm130_vm5, %v198_v32, 0.0 }
 0x239   :  { %138 = vadd.xlane.f32.xlu1 %v137_v33 }
 0x23d   :  { %164 = vadd.xlane.f32.xlu1 %v163_v37 }
 0x2c6   :  { %v139_v38 = vpop.xlane.xlu1 %138 }
 0x2c7   :  { %v150_v39 = vsub.f32 %v139_v38, %v198_v32  ;;  %v152_v40 = vmul.f32 1e-09, %v139_v38 }
 0x2c9   :  { %v151_v41 = vsel %vm149_vm6, %v198_v32, %v150_v39 }
 0x2ca   :  { %v153_v42 = vadd.f32 %v152_v40, %v151_v41  ;;  %v165_v46 = vpop.xlane.xlu1 %164 }
 0x2cc   :  { %199 = vlog2.f32 %v153_v42 }
 0x2cd   :  { %201 = vlog2.f32 %v139_v38 }
 0x2ce   :  { %203 = vrcp.f32 %v165_v46 }
 0x2d6   :  { %v200_v43 = vpop.eup %199 }
 0x2d7   :  { %v156_v44 = vmul.f32 0.6931472, %v200_v43  ;;  %v202_v47 = vpop.eup %201 }
 0x2d8   :  { %v141_v48 = vmul.f32 0.6931472, %v202_v47  ;;  %v204_v52 = vpop.eup %203 }
 0x2d9   :  { %v157_v45 = vsel %vm130_vm5, %v156_v44, 0.0 }
 0x2da   :  { %158 = vadd.xlane.f32.xlu1 %v157_v45  ;;  %v154_v49 = vmul.f32 8.0, %v141_v48 }
 0x367   :  { %v159_v50 = vpop.xlane.xlu1 %158 }
 0x368   :  { %v160_v51 = vsub.f32 %v154_v49, %v159_v50 }
 0x36a   :  { %v167_v53 = vmul.f32 %v204_v52, %v160_v51 }
 0x36c   :  { %169 = vst.msk [vmem:[%s290_s4] sm:$0xff] %vm168_vm7, %v167_v53 }
 0x36d   :  { %174 = vsyncpa [#allocation3], 1 }

</bundles_post_ra>
